<compile_context>
chip_gen: v7x
topology: tpu7x:2x2x1
jax: 0.10.0
libtpu: 0.0.40
codegen_flags: <defaults>
</compile_context>

<pallas_src>
import functools
import math

import jax
import jax.numpy as jnp
from jax.experimental import pallas as pl
from jax.experimental.pallas import tpu as pltpu


def _pe_grid_kernel(gauss_ref, out_ref, *, H, W, F):
    """One lane-tile of the dense random-Fourier positional encoding.

    gauss_ref: (F, 2) float32 -- gaussian projection matrix, transposed and
               pre-scaled by 2*pi (column 0 multiplies x, column 1 multiplies y).
    out_ref:   (2F, T) float32 -- rows 0:F = sin(proj), rows F:2F = cos(proj),
               T = lane-tile of the flattened H*W axis.
    """
    T = out_ref.shape[1]
    i = pl.program_id(0)

    # Flattened spatial positions covered by this tile: p = y * W + x.
    p = i * T + jax.lax.broadcasted_iota(jnp.int32, (1, T), 1)       # (1, T)

    if (W & (W - 1)) == 0:                      # W is a power of two
        shift = int(W).bit_length() - 1
        row = p >> shift
        col = p & (W - 1)
    else:
        row = p // W
        col = p - row * W

    # cx = 2*((col + 0.5)/W) - 1 ; cy = 2*((row + 0.5)/H) - 1   (folded consts)
    cx = col.astype(jnp.float32) * (2.0 / W) + (1.0 / W - 1.0)       # (1, T)
    cy = row.astype(jnp.float32) * (2.0 / H) + (1.0 / H - 1.0)       # (1, T)

    # gauss already carries the 2*pi factor; K == 2, so two broadcasted FMAs
    # on the VPU replace an MXU matmul with a degenerate contraction.
    g0 = gauss_ref[:, 0:1]                                           # (F, 1)
    g1 = gauss_ref[:, 1:2]                                           # (F, 1)
    proj = g0 * cx + g1 * cy                                         # (F, T)

    # Sublane-split writes: full unmasked stores on lane-dense vregs (EUP ops).
    out_ref[0:F, :] = jnp.sin(proj)
    out_ref[F:, :] = jnp.cos(proj)


def _pick_lane_tile(hw, channels, vmem_budget=8 << 20):
    """Pick the lane tile for the flattened H*W axis.

    Prefers the largest multiple-of-128 tile dividing H*W whose double-buffered
    output block fits the budget AND that still gives >= 2 grid steps (so the
    "parallel" axis can be split across TensorCores).  Falls back to a single
    full-extent block when H*W has no 128-multiple divisor.
    """
    candidates = [t for t in (8192, 4096, 2048, 1024, 512, 256, 128)
                  if hw % t == 0 and channels * t * 4 * 2 <= vmem_budget]
    if not candidates:
        return hw
    multi = [t for t in candidates if hw // t >= 2]
    return max(multi) if multi else max(candidates)


@functools.partial(jax.jit, static_argnums=(1,))
def pe_grid_pallas(gaussian_matrix, size):
    """Pallas equivalent of PositionEmbeddingRandom.forward(size).

    Returns an array of shape (2*F, H, W) float32 (PyTorch output layout).
    """
    h, w = size
    num_pos_feats = gaussian_matrix.shape[1]
    C = 2 * num_pos_feats
    HW = h * w

    # Pre-scale by 2*pi once (2*F scalars) and transpose to (F, 2) so the
    # kernel can take cheap column slices.
    g_t = (2.0 * math.pi) * jnp.transpose(gaussian_matrix.astype(jnp.float32))

    T = _pick_lane_tile(HW, C)
    grid = (HW // T,)

    out = pl.pallas_call(
        functools.partial(_pe_grid_kernel, H=h, W=w, F=num_pos_feats),
        out_shape=jax.ShapeDtypeStruct((C, HW), jnp.float32),
        grid=grid,
        in_specs=[pl.BlockSpec((num_pos_feats, 2), lambda i: (0, 0))],
        out_specs=pl.BlockSpec((C, T), lambda i: (0, i)),
        compiler_params=pltpu.CompilerParams(
            dimension_semantics=("parallel",)),
    )(g_t)

    # Output is already channel-major; only a (free) reshape remains.
    return out.reshape(C, h, w)


def pe_grid_reference(gaussian_matrix, size):
    """Pure-JAX reference mirroring the PyTorch code path (for validation)."""
    h, w = size
    grid = jnp.ones((h, w), jnp.float32)
    y_embed = (jnp.cumsum(grid, axis=0) - 0.5) / h
    x_embed = (jnp.cumsum(grid, axis=1) - 0.5) / w
    coords = jnp.stack([x_embed, y_embed], axis=-1)            # (H, W, 2)
    coords = 2.0 * coords - 1.0
    coords = coords @ gaussian_matrix.astype(jnp.float32)      # (H, W, F)
    coords = 2.0 * math.pi * coords
    pe = jnp.concatenate([jnp.sin(coords), jnp.cos(coords)], axis=-1)
    return jnp.transpose(pe, (2, 0, 1))


class PositionEmbeddingRandom:
    def __init__(self, num_pos_feats=64, scale=None, *, key):
        if scale is None or scale <= 0.0:
            scale = 1.0
        self.positional_encoding_gaussian_matrix = (
            scale * jax.random.normal(key, (2, num_pos_feats), jnp.float32)
        )

    def forward(self, size):
        return pe_grid_pallas(self.positional_encoding_gaussian_matrix,
                              tuple(size))

    def __call__(self, size):
        return self.forward(size)


class PromptEncoder:
    def __init__(self, embed_dim, image_embedding_size, input_image_size,
                 mask_in_chans, *, key):
        self.embed_dim = embed_dim
        self.image_embedding_size = image_embedding_size
        self.input_image_size = input_image_size
        self.pe_layer = PositionEmbeddingRandom(embed_dim // 2, key=key)

    def get_dense_pe(self):
        return self.pe_layer(self.image_embedding_size)

    def forward(self):
        # TODO(synk): reference module's forward body is literally `pass`; the
        # pe_layer compute is exposed via get_dense_pe() and runs in Pallas.
        return None

    def __call__(self):
        return self.forward()


if __name__ == "__main__":
    key = jax.random.PRNGKey(0)

    embed_dim = 32                  # -> num_pos_feats = 16
    image_embedding_size = (16, 16)
    input_image_size = (256, 256)
    mask_in_chans = 4

    enc = PromptEncoder(embed_dim, image_embedding_size, input_image_size,
                        mask_in_chans, key=key)

    # Faithful forward() semantics: returns None.
    assert enc() is None

    # Kernel hot path: dense positional encoding (embed_dim, H, W).
    pe = enc.get_dense_pe()
    pe = jax.block_until_ready(pe)

    ref = pe_grid_reference(
        enc.pe_layer.positional_encoding_gaussian_matrix, image_embedding_size)
    ref = jax.block_until_ready(ref)

    assert pe.shape == (embed_dim,) + image_embedding_size, pe.shape
    assert pe.dtype == jnp.float32
    assert jnp.max(jnp.abs(pe - ref)) < 1e-4

    # Exercise the multi-tile grid path (several lane tiles, "parallel" axis).
    size2 = (64, 64)
    pe2 = jax.block_until_ready(
        pe_grid_pallas(enc.pe_layer.positional_encoding_gaussian_matrix, size2))
    ref2 = jax.block_until_ready(
        pe_grid_reference(enc.pe_layer.positional_encoding_gaussian_matrix, size2))
    assert pe2.shape == (embed_dim,) + size2, pe2.shape
    assert jnp.max(jnp.abs(pe2 - ref2)) < 1e-4

    # Exercise a non-power-of-two width (full-extent fallback block).
    size3 = (12, 20)
    pe3 = jax.block_until_ready(
        pe_grid_pallas(enc.pe_layer.positional_encoding_gaussian_matrix, size3))
    ref3 = jax.block_until_ready(
        pe_grid_reference(enc.pe_layer.positional_encoding_gaussian_matrix, size3))
    assert pe3.shape == (embed_dim,) + size3, pe3.shape
    assert jnp.max(jnp.abs(pe3 - ref3)) < 1e-4

    print("KERNEL_OK")
</pallas_src>

<mosaic_0001>
module attributes {stable_mosaic.version = 11 : i64} {
  func.func @_pe_grid_kernel(%arg0: i32, %arg1: memref<16x2xf32, #tpu.memory_space<vmem>>, %arg2: memref<32x128xf32, #tpu.memory_space<vmem>>) attributes {dimension_semantics = [#tpu.dimension_semantics<parallel>], iteration_bounds = array<i64: 2>, scalar_prefetch = 0 : i64, scratch_operands = 0 : i64, tpu.core_type = #tpu.core_type<tc>, window_params = [{pipeline_mode = #tpu.pipeline_mode<synchronous>, transform_indices = @transform_0, window_bounds = array<i64: 16, 2>}, {transform_indices = @transform_1, window_bounds = array<i64: 32, 128>}]} {
    %c128_i32 = arith.constant 128 : i32
    %0 = arith.muli %arg0, %c128_i32 : i32
    %1 = tpu.iota {dimensions = array<i32: 1>} : vector<1x128xi32>
    %2 = vector.broadcast %0 : i32 to vector<1x128xi32>
    %3 = arith.addi %2, %1 : vector<1x128xi32>
    %c4_i32 = arith.constant 4 : i32
    %4 = vector.broadcast %c4_i32 : i32 to vector<1x128xi32>
    %5 = arith.shrsi %3, %4 : vector<1x128xi32>
    %c15_i32 = arith.constant 15 : i32
    %6 = vector.broadcast %c15_i32 : i32 to vector<1x128xi32>
    %7 = arith.andi %3, %6 : vector<1x128xi32>
    %8 = arith.sitofp %7 : vector<1x128xi32> to vector<1x128xf32>
    %cst = arith.constant 1.250000e-01 : f32
    %9 = vector.broadcast %cst : f32 to vector<1x128xf32>
    %10 = arith.mulf %8, %9 : vector<1x128xf32>
    %cst_0 = arith.constant -9.375000e-01 : f32
    %11 = vector.broadcast %cst_0 : f32 to vector<1x128xf32>
    %12 = arith.addf %10, %11 : vector<1x128xf32>
    %13 = arith.sitofp %5 : vector<1x128xi32> to vector<1x128xf32>
    %cst_1 = arith.constant 1.250000e-01 : f32
    %14 = vector.broadcast %cst_1 : f32 to vector<1x128xf32>
    %15 = arith.mulf %13, %14 : vector<1x128xf32>
    %cst_2 = arith.constant -9.375000e-01 : f32
    %16 = vector.broadcast %cst_2 : f32 to vector<1x128xf32>
    %17 = arith.addf %15, %16 : vector<1x128xf32>
    %c0 = arith.constant 0 : index
    %c0_3 = arith.constant 0 : index
    %18 = vector.load %arg1[%c0, %c0_3] : memref<16x2xf32, #tpu.memory_space<vmem>>, vector<16x1xf32>
    %c0_4 = arith.constant 0 : index
    %c1 = arith.constant 1 : index
    %19 = vector.load %arg1[%c0_4, %c1] : memref<16x2xf32, #tpu.memory_space<vmem>>, vector<16x1xf32>
    %20 = vector.broadcast %18 : vector<16x1xf32> to vector<16x128xf32>
    %21 = vector.broadcast %12 : vector<1x128xf32> to vector<16x128xf32>
    %22 = arith.mulf %20, %21 : vector<16x128xf32>
    %23 = vector.broadcast %19 : vector<16x1xf32> to vector<16x128xf32>
    %24 = vector.broadcast %17 : vector<1x128xf32> to vector<16x128xf32>
    %25 = arith.mulf %23, %24 : vector<16x128xf32>
    %26 = arith.addf %22, %25 : vector<16x128xf32>
    %27 = math.sin %26 : vector<16x128xf32>
    %c0_5 = arith.constant 0 : index
    %c0_6 = arith.constant 0 : index
    %28 = vector.load %arg2[%c0_5, %c0_6] : memref<32x128xf32, #tpu.memory_space<vmem>>, vector<16x128xf32>
    tpu.vector_store %arg2[%c0_5, %c0_6], %27 {strides = array<i32>} : memref<32x128xf32, #tpu.memory_space<vmem>>, vector<16x128xf32>,
    %29 = math.cos %26 : vector<16x128xf32>
    %c16 = arith.constant 16 : index
    %c0_7 = arith.constant 0 : index
    %30 = vector.load %arg2[%c16, %c0_7] : memref<32x128xf32, #tpu.memory_space<vmem>>, vector<16x128xf32>
    tpu.vector_store %arg2[%c16, %c0_7], %29 {strides = array<i32>} : memref<32x128xf32, #tpu.memory_space<vmem>>, vector<16x128xf32>,
    return
  }
  func.func @transform_0(%arg0: i32) -> (i32, i32) {
    %c0_i32 = arith.constant 0 : i32
    %c0_i32_0 = arith.constant 0 : i32
    %c0_i32_1 = arith.constant 0 : i32
    return %c0_i32, %c0_i32_0 : i32, i32
  }
  func.func @transform_1(%arg0: i32) -> (i32, i32) {
    %c0_i32 = arith.constant 0 : i32
    %c0_i32_0 = arith.constant 0 : i32
    return %c0_i32, %arg0 : i32, i32
  }
}

</mosaic_0001>

<bundles_post_ra>
// kernel: pe_grid_pallas.1
= control target key start
LH: loop header
LB: loop body
LE: loop exit
PB: predicated region body
PF: predicated region fallthrough
CT: control target
= control target key end

     0   :  { %s758_s6 = smov 0   ;;  %s760_s7 = smov 0   ;;  %s881_s0 = inlined_call_operand.vmem [shape: f32[16,2], index: 0, kind: input, shape index: {}]   ;;  %s882_s1 = inlined_call_operand.vmem [shape: f32[32,256], index: 1, kind: output, shape index: {}]  }
   0x1   :  { %s762_s8 = smov 0  }
   0x2 LB: > { %s771_s9 = sadd.s32 4294967295, %s738_s8   ;;  %s773_s10 = sadd.s32 1, %s738_s8   ;;  %s738_s8 = sphi %s762_s8, %s886_s8   ;;  %s734_s7 = sphi %s760_s7, %s885_s7   ;;  %s730_s6 = sphi %s758_s6, %s884_s6  }
   0x3   : > { %s36_s11 = ssub.s32 %s738_s8, %s773_s10  ;;  %s39_s12 = sadd.s32 1, %s734_s7 }
   0x4   : > { %p37_p0 = scmp.eq.s32.totalorder %s36_s11, 0  ;;  %p49_p1 = scmp.ne.s32.totalorder %s734_s7, %s730_s6 }
   0x5   : > { %p50_p2 = scmp.eq.s32.totalorder %s771_s9, 1  ;;  %p642_p3 = scmp.ge.s32.totalorder %s738_s8, 1 }
   0x6   : > { %s781_s13 = scalar_select %p37_p0, %s734_s7, %s39_s12  }
   0x7   : > { %p783_p4 = por %p50_p2, %p49_p1  ;;  %p77_p5 = scmp.lt.s32.totalorder %s738_s8, 3 }
   0x9   : > { %p78_p6 = pnand %p642_p3, %p77_p5 }
   0xa   : > { %v104_v0 = vld [vmem:[%s881_s0] sm:$0xff] (!%p78_p6)  ;;  %v740_v1 = vmov (!%p78_p6), 1   ;;  %v741_v2 = vmov (!%p78_p6), 0   ;;  %v105_v3 = vld [vmem:[%s881_s0 + $0x8] sm:$0xff] (!%p78_p6)  ;;  %v92_v4 = vlaneseq (!%p78_p6)  ;;  %s644_s19 = sshll.u32 (!%p78_p6), %s771_s9, 7  ;;  %s88_s20 = sand.u32 (!%p78_p6), 1, %s730_s6  }
   0xb   : > { %81 = sbr.rel (%p78_p6) target bundleno = 243 (0xf3), region = 24  ;;  %706 = vset.pattern.permute.xlu1 (!%p78_p6), %v740_v1  ;;  %705 = vset.pattern.permute.xlu0 (!%p78_p6), %v741_v2  ;;  %v94_v6 = vstv (!%p78_p6), %s644_s19  ;;  %v742_v42 = vmov (!%p78_p6), 683565275   ;;  %v743_v46 = vmov (!%p78_p6), 2475754826   ;;  %s643_s21 = sshll.u32 (!%p78_p6), %s88_s20, 5 }
   0xc   : > { %119 = vperm.xlu1 (!%p78_p6), %706, %v104_v0   ;;  %108 = vperm.xlu0 (!%p78_p6), %705, %v104_v0   ;;  %v93_v5 = vand.u32 (!%p78_p6), 127, %v92_v4  ;;  %v744_v48 = vmov (!%p78_p6), 2131351028   ;;  %v745_v50 = vmov (!%p78_p6), 2102212464   ;;  %s854_s22 = scalar_lea.vmem (!%p78_p6), [#allocation2], %s643_s21 }
   0xd   : > { %v746_v52 = vmov (!%p78_p6), 920167782   ;;  %v747_v59 = vmov (!%p78_p6), 1326507024  }
   0xe   : > { %v95_v7 = vadd.s32 (!%p78_p6), %v94_v6, %v93_v5 }
  0x10   : > { %123 = vperm.xlu1 (!%p78_p6), %706, %v105_v3   ;;  %113 = vperm.xlu0 (!%p78_p6), %705, %v105_v3   ;;  %v96_v8 = vshra.s32 (!%p78_p6), %v95_v7, 4  ;;  %v97_v9 = vand.u32 (!%p78_p6), 15, %v95_v7 }
  0x12   : > { %v101_v10 = vcvt.s32.f32 %v96_v8  ;;  %v98_v11 = vcvt.s32.f32 %v97_v9  ;;  %s662_s23 = sshll.u32 (%p783_p4), %s771_s9, 3 }
  0x13   : > { %s556_s26 = scalar_lea.vmem (%p783_p4), %s882_s1, %s662_s23 }
  0x14   : > { %707 = vset.pattern.permute.xlu0 %v740_v1  ;;  %v102_v12 = vmul.f32 0.125, %v101_v10  ;;  %v99_v13 = vmul.f32 0.125, %v98_v11 }
  0x16   : > { %v103_v14 = vadd.f32 -0.9375, %v102_v12  ;;  %v100_v15 = vadd.f32 -0.9375, %v99_v13 }
  0x8b   : > { %v120_v16 = vpop.permute.xlu1 %119  ;;  %v109_v17 = vpop.permute.xlu0 %108 }
  0x8c   : > { %v126_v18 = vmul.f32 %v120_v16, %v103_v14  ;;  %v116_v19 = vmul.f32 %v109_v17, %v100_v15 }
  0x8e   : > { %v794_v20 = vadd.f32 %v126_v18, %v116_v19 }
  0x8f   : > { %v124_v21 = vpop.permute.xlu1 %123  ;;  %v114_v22 = vpop.permute.xlu0 %113 }
  0x90   : > { %v130_v23 = vand.u32 2147483647, %v794_v20  ;;  %v133_v24 = vand.u32 2139095040, %v794_v20  ;;  %v127_v25 = vmul.f32 %v124_v21, %v103_v14  ;;  %v117_v26 = vmul.f32 %v114_v22, %v100_v15 }
  0x91   : > { %vm132_vm14 = vcmp.lt.s32.totalorder %v794_v20, 0 }
  0x92   : > { %v134_v27 = vshrl.u32 %v133_v24, 23  ;;  %v137_v28 = vand.u32 8388607, %v130_v23  ;;  %v800_v29 = vadd.f32 %v127_v25, %v117_v26  ;;  %vm131_vm15 = vcmp.le.f32.partialorder %v130_v23, 0.7853982 }
  0x94   : > { %v645_v30 = vadd.s32 4294967169, %v134_v27  ;;  %v237_v31 = vand.u32 2139095040, %v800_v29  ;;  %v138_v33 = vor.u32 8388608, %v137_v28  ;;  %v234_v35 = vand.u32 2147483647, %v800_v29 }
  0x96   : > { %v140_v32 = vadd.s32 1, %v645_v30  ;;  %v238_v34 = vshrl.u32 %v237_v31, 23  ;;  %v804_v40 = vshll.u32 %v138_v33, 8  ;;  %v241_v44 = vand.u32 8388607, %v234_v35 }
  0x98   : > { %vm141_vm0 = vcmp.gt.s32.totalorder %v140_v32, 0  ;;  %v649_v37 = vadd.s32 4294967169, %v238_v34  ;;  %v242_v10 = vor.u32 8388608, %v241_v44 }
  0x99   : > { %v142_v36 = vsel %vm141_vm0, %v140_v32, 0  ;;  %vm236_vm0 = vcmp.lt.s32.totalorder %v800_v29, 0 }
  0x9a   : > { %v143_v38 = vshrl.u32 %v142_v36, 5  ;;  %v144_v39 = vand.u32 31, %v142_v36  ;;  %v244_v45 = vadd.s32 1, %v649_v37  ;;  %v282_v25 = vshll.u32 %v242_v10, 8 }
  0x9c   : > { %v145_v41 = vsub.s32 32, %v144_v39  ;;  %v147_v43 = vshll.u32 %v742_v42, %v144_v39  ;;  %v150_v47 = vshll.u32 %v743_v46, %v144_v39  ;;  %v153_v49 = vshll.u32 %v744_v48, %v144_v39 }
  0x9d   : > { %v156_v51 = vshll.u32 %v745_v50, %v144_v39  ;;  %v159_v53 = vshll.u32 %v746_v52, %v144_v39  ;;  %vm162_vm1 = vcmp.lt.s32.totalorder %v143_v38, 1  ;;  %vm164_vm2 = vcmp.lt.s32.totalorder %v143_v38, 3 }
  0x9e   : > { %v148_v54 = vshrl.u32 %v743_v46, %v145_v41  ;;  %v151_v55 = vshrl.u32 %v744_v48, %v145_v41  ;;  %v154_v56 = vshrl.u32 %v745_v50, %v145_v41  ;;  %v146_v57 = vshrl.u32 %v742_v42, %v145_v41 }
  0x9f   : > { %v157_v58 = vshrl.u32 %v746_v52, %v145_v41  ;;  %v160_v60 = vshrl.u32 %v747_v59, %v145_v41  ;;  %vm245_vm3 = vcmp.gt.s32.totalorder %v244_v45, 0  ;;  %vm165_vm4 = vcmp.lt.s32.totalorder %v143_v38, 4 }
  0xa0   : > { %v149_v61 = vor.u32 %v148_v54, %v147_v43  ;;  %v152_v62 = vor.u32 %v151_v55, %v150_v47  ;;  %v155_v63 = vor.u32 %v154_v56, %v153_v49  ;;  %v246_v2 = vsel %vm245_vm3, %v244_v45, 0 }
  0xa1   : > { %v158_v0 = vor.u32 %v157_v58, %v156_v51  ;;  %v161_v1 = vor.u32 %v160_v60, %v159_v53  ;;  %vm163_vm5 = vcmp.lt.s32.totalorder %v143_v38, 2  ;;  %v248_v13 = vand.u32 31, %v246_v2 }
  0xa2   : > { %v166_v3 = vsel %vm162_vm1, %v146_v57, %v149_v61  ;;  %v167_v4 = vsel %vm165_vm4, %v155_v63, 2102212464  ;;  %v170_v5 = vsel %vm162_vm1, %v149_v61, %v152_v62  ;;  %v174_v6 = vsel %vm162_vm1, %v152_v62, %v155_v63 }
  0xa3   : > { %v168_v7 = vsel %vm164_vm2, %v152_v62, %v167_v4  ;;  %v171_v8 = vsel %vm165_vm4, %v158_v0, 920167782  ;;  %v175_v9 = vsel %vm165_vm4, %v161_v1, 1326507024  ;;  %v247_v22 = vshrl.u32 %v246_v2, 5 }
  0xa4   : > { %v172_v11 = vsel %vm164_vm2, %v155_v63, %v171_v8  ;;  %v176_v12 = vsel %vm164_vm2, %v158_v0, %v175_v9  ;;  %v169_v14 = vsel %vm163_vm5, %v166_v3, %v168_v7  ;;  %v249_v24 = vsub.s32 32, %v248_v13 }
  0xa5   : > { %v173_v15 = vsel %vm163_vm5, %v170_v5, %v172_v11  ;;  %v177_v16 = vsel %vm163_vm5, %v174_v6, %v176_v12  ;;  %v185_v26 = vmul.u32 %v804_v40, %v169_v14  ;;  %v251_v27 = vshll.u32 %v742_v42, %v248_v13 }
  0xa6   : > { %v817_v17 = vmul.u32.u64.low %v804_v40, %v177_v16  ;;  %v818_v18 = vmul.u32.u64.high %v804_v40, %v177_v16, %v817_v17  ;;  %v821_v19 = vmul.u32.u64.low %v804_v40, %v173_v15  ;;  %v822_v21 = vmul.u32.u64.high %v804_v40, %v173_v15, %v821_v19 }
  0xa7   : > { %v254_v28 = vshll.u32 %v743_v46, %v248_v13  ;;  %v257_v30 = vshll.u32 %v744_v48, %v248_v13  ;;  %v252_v31 = vshrl.u32 %v743_v46, %v249_v24  ;;  %v255_v32 = vshrl.u32 %v744_v48, %v249_v24 }
  0xa8   : > { %v258_v33 = vshrl.u32 %v745_v50, %v249_v24  ;;  %v260_v34 = vshll.u32 %v745_v50, %v248_v13  ;;  %vm187_vm6 = vc.u32 %v818_v18, %v821_v19  ;;  %v188_v36 = vadd.s32 1, %v822_v21 }
  0xa9   : > { %v261_v37 = vshrl.u32 %v746_v52, %v249_v24  ;;  %v263_v38 = vshll.u32 %v746_v52, %v248_v13  ;;  %v253_v39 = vor.u32 %v252_v31, %v251_v27  ;;  %v256_v41 = vor.u32 %v255_v32, %v254_v28 }
  0xaa   : > { %v259_v43 = vor.u32 %v258_v33, %v257_v30  ;;  %v264_v44 = vshrl.u32 %v747_v59, %v249_v24  ;;  %v189_v40 = vsel %vm187_vm6, %v188_v36, %v822_v21  ;;  %vm266_vm7 = vcmp.lt.s32.totalorder %v247_v22, 1 }
  0xab   : > { %v262_v45 = vor.u32 %v261_v37, %v260_v34  ;;  %vm269_vm8 = vcmp.lt.s32.totalorder %v247_v22, 4  ;;  %v190_v46 = vadd.s32 %v189_v40, %v185_v26  ;;  %vm268_vm9 = vcmp.lt.s32.totalorder %v247_v22, 3 }
  0xac   : > { %v265_v47 = vor.u32 %v264_v44, %v263_v38  ;;  %v271_v48 = vsel %vm269_vm8, %v259_v43, 2102212464  ;;  %v250_v49 = vshrl.u32 %v742_v42, %v249_v24  ;;  %v274_v50 = vsel %vm266_vm7, %v253_v39, %v256_v41 }
  0xad   : > { %v275_v51 = vsel %vm269_vm8, %v262_v45, 920167782  ;;  %v278_v53 = vsel %vm266_vm7, %v256_v41, %v259_v43  ;;  %v191_v54 = vadd.s32 536870912, %v190_v46  ;;  %vm267_vm10 = vcmp.lt.s32.totalorder %v247_v22, 2 }
  0xae   : > { %v276_v52 = vsel %vm268_vm9, %v259_v43, %v275_v51  ;;  %v279_v55 = vsel %vm269_vm8, %v265_v47, 1326507024  ;;  %v270_v56 = vsel %vm266_vm7, %v250_v49, %v253_v39  ;;  %v272_v57 = vsel %vm268_vm9, %v256_v41, %v271_v48 }
  0xaf   : > { %v277_v58 = vsel %vm267_vm10, %v274_v50, %v276_v52  ;;  %v280_v59 = vsel %vm268_vm9, %v262_v45, %v279_v55  ;;  %v192_v60 = vshrl.u32 %v191_v54, 30  ;;  %v273_v2 = vsel %vm267_vm10, %v270_v56, %v272_v57 }
  0xb0   : > { %v281_v61 = vsel %vm267_vm10, %v278_v53, %v280_v59  ;;  %v832_v62 = vmul.u32.u64.low %v282_v25, %v277_v58  ;;  %v833_v63 = vmul.u32.u64.high %v282_v25, %v277_v58, %v832_v62  ;;  %v289_v5 = vmul.u32 %v282_v25, %v273_v2 }
  0xb1   : > { %v835_v0 = vmul.u32.u64.low %v282_v25, %v281_v61  ;;  %v836_v1 = vmul.u32.u64.high %v282_v25, %v281_v61, %v835_v0  ;;  %v193_v42 = vshll.u32 %v192_v60, 30  ;;  %v186_v17 = vadd.s32 %v821_v19, %v818_v18 }
  0xb2   : > { %v292_v4 = vadd.s32 1, %v833_v63  ;;  %v216_v39 = vsub.s32 4, %v192_v60  ;;  %vm235_vm1 = vcmp.le.f32.partialorder %v234_v35, 0.7853982  ;;  %vm222_vm8 = vweird.f32 %v794_v20 }
  0xb3   : > { %v194_v3 = vsub.s32 %v190_v46, %v193_v42  ;;  %vm291_vm11 = vc.u32 %v836_v1, %v832_v62  ;;  %v290_v18 = vadd.s32 %v832_v62, %v836_v1 }
  0xb4   : > { %v293_v7 = vsel %vm291_vm11, %v292_v4, %v833_v63  ;;  %v217_v48 = vsel %vm132_vm14, %v216_v39, %v192_v60 }
  0xb5   : > { %v196_v6 = vsub.s32 0, %v194_v3  ;;  %v294_v8 = vadd.s32 %v293_v7, %v289_v5  ;;  %v219_v53 = vsel %vm131_vm15, 0, %v217_v48 }
  0xb6   : > { %v223_v56 = vadd.s32 3, %v219_v53  ;;  %v433_v59 = vand.u32 3, %v219_v53 }
  0xb7   : > { %v646_v9 = vmin.u32 %v196_v6, %v194_v3  ;;  %v295_v10 = vadd.s32 536870912, %v294_v8 }
  0xb8   : > { %v224_v23 = vand.u32 3, %v223_v56  ;;  %vm438_vm2 = vcmp.eq.s32.totalorder %v433_v59, 2  ;;  %vm435_vm5 = vcmp.eq.s32.totalorder %v433_v59, 0  ;;  %vm434_vm7 = vcmp.lt.s32.totalorder %v433_v59, 2 }
  0xb9   : > { %v198_v11 = vclz %v646_v9  ;;  %v296_v12 = vshrl.u32 %v295_v10, 30 }
  0xba   : > { %vm229_vm3 = vcmp.eq.s32.totalorder %v224_v23, 2  ;;  %vm226_vm4 = vcmp.eq.s32.totalorder %v224_v23, 0  ;;  %vm225_vm6 = vcmp.lt.s32.totalorder %v224_v23, 2 }
  0xbb   : > { %v647_v13 = vadd.s32 4294967294, %v198_v11  ;;  %v297_v14 = vshll.u32 %v296_v12, 30  ;;  %v320_v58 = vsub.s32 4, %v296_v12 }
  0xbd   : > { %vm648_vm12 = vcmp.lt.s32.totalorder %v647_v13, 0  ;;  %v298_v16 = vsub.s32 %v294_v8, %v297_v14  ;;  %v321_v62 = vsel %vm236_vm0, %v320_v58, %v296_v12 }
  0xbe   : > { %v201_v15 = vsel %vm648_vm12, 0, %v647_v13 }
  0xbf   : > { %v202_v21 = vsub.s32 32, %v201_v15  ;;  %v206_v22 = vsub.s32 4294967266, %v201_v15  ;;  %v300_v24 = vsub.s32 0, %v298_v16  ;;  %v203_v25 = vshll.u32 %v194_v3, %v201_v15 }
  0xc0   : > { %v323_v3 = vsel %vm235_vm1, 0, %v321_v62 }
  0xc1   : > { %v204_v26 = vshrl.u32 %v186_v17, %v202_v21  ;;  %v207_v27 = vadd.s32 127, %v206_v22  ;;  %v650_v28 = vmin.u32 %v300_v24, %v298_v16  ;;  %v327_v9 = vadd.s32 3, %v323_v3 }
  0xc2   : > { %v536_v13 = vand.u32 3, %v323_v3 }
  0xc3   : > { %v205_v30 = vor.u32 %v204_v26, %v203_v25  ;;  %v208_v31 = vshll.u32 %v207_v27, 23  ;;  %v302_v32 = vclz %v650_v28  ;;  %v328_v12 = vand.u32 3, %v327_v9 }
  0xc4   : > { %vm541_vm10 = vcmp.eq.s32.totalorder %v536_v13, 2  ;;  %vm538_vm12 = vcmp.eq.s32.totalorder %v536_v13, 0 }
  0xc5   : > { %v209_v33 = vor.u32 4788187, %v208_v31  ;;  %v651_v34 = vadd.s32 4294967294, %v302_v32  ;;  %v212_v37 = vcvt.s32.f32 %v205_v30  ;;  %vm333_vm9 = vcmp.eq.s32.totalorder %v328_v12, 2 }
  0xc6   : > { %vm330_vm11 = vcmp.eq.s32.totalorder %v328_v12, 0 }
  0xc7   : > { %v210_v36 = vand.u32 2147483647, %v209_v33  ;;  %vm652_vm13 = vcmp.lt.s32.totalorder %v651_v34, 0 }
  0xc8   : > { %v305_v41 = vsel %vm652_vm13, 0, %v651_v34  ;;  %vm329_vm13 = vcmp.lt.s32.totalorder %v328_v12, 2 }
  0xc9   : > { %v213_v38 = vmul.f32 %v212_v37, %v210_v36  ;;  %v306_v19 = vsub.s32 32, %v305_v41  ;;  %v310_v43 = vsub.s32 4294967266, %v305_v41  ;;  %v307_v40 = vshll.u32 %v298_v16, %v305_v41 }
  0xcb   : > { %v214_v44 = vxor.u32 2147483648, %v213_v38  ;;  %v308_v45 = vshrl.u32 %v290_v18, %v306_v19  ;;  %v311_v46 = vadd.s32 127, %v310_v43 }
  0xcd   : > { %v215_v47 = vsel %vm132_vm14, %v214_v44, %v213_v38  ;;  %v309_v50 = vor.u32 %v308_v45, %v307_v40  ;;  %v312_v51 = vshll.u32 %v311_v46, 23  ;;  %vm537_vm14 = vcmp.lt.s32.totalorder %v536_v13, 2 }
  0xce   : > { %v218_v49 = vsel %vm131_vm15, %v794_v20, %v215_v47  ;;  %vm326_vm15 = vweird.f32 %v800_v29 }
  0xcf   : > { %708 = vcosq.f32 %v218_v49  ;;  %v313_v54 = vor.u32 4788187, %v312_v51  ;;  %v316_v55 = vcvt.s32.f32 %v309_v50 }
  0xd0   : > { %710 = vsinq.f32 %v218_v49 }
  0xd1   : > { %v314_v52 = vand.u32 2147483647, %v313_v54 }
  0xd3   : > { %v317_v57 = vmul.f32 %v316_v55, %v314_v52 }
  0xd5   : > { %v318_v61 = vxor.u32 2147483648, %v317_v57 }
  0xd7   : > { %v319_v60 = vsel %vm236_vm0, %v318_v61, %v317_v57 }
  0xd8   : > { %v322_v0 = vsel %vm235_vm1, %v800_v29, %v319_v60 }
  0xd9   : > { %v709_v63 = vpop.eup %708  ;;  %712 = vcosq.f32 %v322_v0 }
  0xda   : > { %v711_v1 = vpop.eup %710  ;;  %v230_v42 = vxor.u32 2147483648, %v709_v63  ;;  %714 = vsinq.f32 %v322_v0 }
  0xdb   : > { %v227_v2 = vxor.u32 2147483648, %v711_v1 }
  0xdc   : > { %v231_v4 = vsel %vm229_vm3, %v230_v42, %v711_v1  ;;  %v440_v5 = vsel %vm438_vm2, %v230_v42, %v711_v1 }
  0xdd   : > { %v228_v35 = vsel %vm226_vm4, %v709_v63, %v227_v2  ;;  %v437_v6 = vsel %vm435_vm5, %v709_v63, %v227_v2 }
  0xde   : > { %v232_v7 = vsel %vm225_vm6, %v228_v35, %v231_v4  ;;  %v441_v8 = vsel %vm434_vm7, %v437_v6, %v440_v5 }
  0xdf   : > { %v233_v10 = vsel %vm222_vm8, nan, %v232_v7  ;;  %v442_v11 = vsel %vm222_vm8, nan, %v441_v8 }
  0xe0   : > { %338 = vst [vmem:[%s854_s22] sm:$0xff] %v233_v10  ;;  %546 = vst [vmem:[%s854_s22 + $0x10] sm:$0xff] %v442_v11 }
  0xe3   : > { %v713_v14 = vpop.eup %712 }
  0xe4   : > { %v715_v15 = vpop.eup %714  ;;  %v334_v16 = vxor.u32 2147483648, %v713_v14  ;;  %554 = sbr.rel (!%p783_p4) target bundleno = 243 (0xf3), region = 28 }
  0xe5   : > { %v331_v17 = vxor.u32 2147483648, %v715_v15 }
  0xe6   : > { %v335_v20 = vsel %vm333_vm9, %v334_v16, %v715_v15  ;;  %v543_v21 = vsel %vm541_vm10, %v334_v16, %v715_v15 }
  0xe7   : > { %v332_v22 = vsel %vm330_vm11, %v713_v14, %v331_v17  ;;  %v540_v24 = vsel %vm538_vm12, %v713_v14, %v331_v17  ;;  %v590_v30 = vld [vmem:[%s854_s22] sm:$0xff] (%p783_p4)  ;;  %v594_v32 = vld [vmem:[%s854_s22 + $0x10] sm:$0xff] (%p783_p4) }
  0xe8   : > { %v336_v25 = vsel %vm329_vm13, %v332_v22, %v335_v20  ;;  %v544_v26 = vsel %vm537_vm14, %v540_v24, %v543_v21  ;;  %591 = vst [vmem:[%s556_s26] sm:$0xff] (%p783_p4), %v590_v30  ;;  %595 = vst [vmem:[%s556_s26 + $0x20] sm:$0xff] (%p783_p4), %v594_v32 }
  0xe9   : > { %v337_v27 = vsel %vm326_vm15, nan, %v336_v25  ;;  %v545_v28 = vsel %vm326_vm15, nan, %v544_v26 }
  0xea   : > { %339 = vst [vmem:[%s854_s22 + $0x8] sm:$0xff] %v337_v27  ;;  %547 = vst [vmem:[%s854_s22 + $0x18] sm:$0xff] %v545_v28 }
  0xf1   : > { %v592_v31 = vld [vmem:[%s854_s22 + $0x8] sm:$0xff]  ;;  %v596_v29 = vld [vmem:[%s854_s22 + $0x18] sm:$0xff] }
  0xf2   : > { %593 = vst [vmem:[%s556_s26 + $0x10] sm:$0xff] %v592_v31  ;;  %597 = vst [vmem:[%s556_s26 + $0x30] sm:$0xff] %v596_v29 }
  0xf3 PF: > { %p8_p7 = scmp.ge.s32.totalorder %s773_s10, 4   ;;  %s884_s6 = smov %s734_s7 }
  0xf4   : > { %s885_s7 = smov %s781_s13  ;;  %s886_s8 = smov %s773_s10 }
  0xf5   :  { %10 = sbr.rel (!%p8_p7) target bundleno = 2 (0x2), region = 89 }

</bundles_post_ra>
